<compile_context>
chip_gen: v7x
topology: tpu7x:2x2x1
jax: 0.10.0
libtpu: 0.0.40
codegen_flags: <defaults>
</compile_context>

<pallas_src>
import functools

import jax
import jax.numpy as jnp
from jax.experimental import pallas as pl
from jax.experimental.pallas import tpu as pltpu

LANE = 128


def _round_up(x, m):
    return ((x + m - 1) // m) * m


def _pick_tile(n_pad, target):
    """Largest multiple of 128 <= target that divides n_pad (n_pad % 128 == 0)."""
    t = min(_round_up(target, LANE), n_pad)
    t -= t % LANE
    while n_pad % t:
        t -= LANE
    return max(t, LANE)


@functools.lru_cache(maxsize=1)
def _vmem_limit_bytes():
    """Generation-aware scoped-VMEM request: ~3/4 of physical, capped at 100 MiB."""
    try:
        cap = int(pltpu.get_tpu_info().vmem_capacity_bytes)
    except Exception:
        cap = 64 * 1024 * 1024  # conservative (v7x physical per-TC VMEM)
    return min((cap * 3) // 4, 100 * 1024 * 1024)


def _padded_nodes(n, tm_target=512):
    """Pad N so big tiles still divide it (avoid 128-tile collapse for awkward N)."""
    n_pad = _round_up(n, LANE)
    if n_pad >= 2 * tm_target and n_pad % tm_target:
        n_pad = _round_up(n_pad, tm_target)
    return n_pad


# ----------------------- kernel 1: fused dual projection -------------------- #
def proj_kernel(x_ref, w_ref, b_ref, s_ref, h_ref, *, fout_p):
    """Per row tile: P = X @ [W_self|W_neigh]; S = P[:, :F]+b (f32); H = P[:, F:] (bf16)."""
    p = jnp.dot(x_ref[...], w_ref[...], preferred_element_type=jnp.float32)
    s_ref[...] = p[:, :fout_p] + b_ref[...]
    h_ref[...] = p[:, fout_p:].astype(h_ref.dtype)


def _project(x_bf, w_cat_bf, b_f32, tm):
    n_pad, fin_p = x_bf.shape
    fout2 = w_cat_bf.shape[1]
    fout_p = fout2 // 2
    kern = functools.partial(proj_kernel, fout_p=fout_p)
    return pl.pallas_call(
        kern,
        out_shape=(
            jax.ShapeDtypeStruct((n_pad, fout_p), jnp.float32),   # S = X@Ws + b
            jax.ShapeDtypeStruct((n_pad, fout_p), jnp.bfloat16),  # H = X@Wn
        ),
        grid_spec=pltpu.PrefetchScalarGridSpec(
            num_scalar_prefetch=0,
            grid=(n_pad // tm,),
            in_specs=[
                pl.BlockSpec((tm, fin_p), lambda i: (i, 0)),
                pl.BlockSpec((fin_p, fout2), lambda i: (0, 0)),   # resident fused weight
                pl.BlockSpec((1, fout_p), lambda i: (0, 0)),      # resident bias
            ],
            out_specs=(
                pl.BlockSpec((tm, fout_p), lambda i: (i, 0)),
                pl.BlockSpec((tm, fout_p), lambda i: (i, 0)),
            ),
        ),
        compiler_params=pltpu.CompilerParams(
            dimension_semantics=("parallel",),
            vmem_limit_bytes=_vmem_limit_bytes(),
        ),
    )(x_bf, w_cat_bf, b_f32)


# -------------------- kernel 2: tiled mean aggregation ---------------------- #
def agg_kernel(a_ref, h_ref, s_ref, inv_ref, o_ref, *, tk, h_resident):
    """o[i] = inv_deg[i] * sum_k A01[i,k] @ H[k] + S[i] (accumulate in o_ref)."""
    k = pl.program_id(1)
    a = a_ref[...].astype(jnp.bfloat16)           # int8 (0/1/multiplicity) -> bf16
    if h_resident:
        start = pl.multiple_of(k * tk, tk)
        h = h_ref[pl.ds(start, tk), :]            # H resident: slice the k-th chunk
    else:
        h = h_ref[...]
    part = jnp.dot(a, h, preferred_element_type=jnp.float32)

    @pl.when(k == 0)
    def _():
        o_ref[...] = part

    @pl.when(k > 0)
    def _():
        o_ref[...] += part

    @pl.when(k == pl.num_programs(1) - 1)
    def _():
        o_ref[...] = o_ref[...] * inv_ref[...] + s_ref[...]


def _aggregate(a_i8, h_bf, s_f32, inv_deg, tm, tk, h_resident):
    n_pad = a_i8.shape[0]
    fout_p = h_bf.shape[1]
    kern = functools.partial(agg_kernel, tk=tk, h_resident=h_resident)
    if h_resident:
        h_spec = pl.BlockSpec((n_pad, fout_p), lambda i, k: (0, 0))   # one DMA, stays in VMEM
    else:
        h_spec = pl.BlockSpec((tk, fout_p), lambda i, k: (k, 0))
    return pl.pallas_call(
        kern,
        out_shape=jax.ShapeDtypeStruct((n_pad, fout_p), jnp.float32),
        grid_spec=pltpu.PrefetchScalarGridSpec(
            num_scalar_prefetch=0,
            grid=(n_pad // tm, n_pad // tk),
            in_specs=[
                pl.BlockSpec((tm, tk), lambda i, k: (i, k)),          # int8 A tile
                h_spec,                                               # H
                pl.BlockSpec((tm, fout_p), lambda i, k: (i, 0)),      # S (epilogue only)
                pl.BlockSpec((tm, 1), lambda i, k: (i, 0)),           # inv_deg (epilogue)
            ],
            out_specs=pl.BlockSpec((tm, fout_p), lambda i, k: (i, 0)),
        ),
        compiler_params=pltpu.CompilerParams(
            dimension_semantics=("parallel", "arbitrary"),
            vmem_limit_bytes=_vmem_limit_bytes(),
        ),
    )(a_i8, h_bf, s_f32, inv_deg)


# ------------------------------ SAGE wrapper -------------------------------- #
@functools.partial(jax.jit, static_argnames=("tm_target", "tk_target"))
def sage_conv_pallas(x, adj01, inv_deg, w_self, w_neigh, b, *,
                     tm_target=512, tk_target=1024):
    n, fin = x.shape
    fout = w_self.shape[1]
    n_pad = adj01.shape[0]

    fin_p = _round_up(fin, LANE)
    fout_p = _round_up(fout, LANE)

    tm = _pick_tile(n_pad, tm_target)
    tk = _pick_tile(n_pad, tk_target)
    # v7x has 2 TensorCores: give the "parallel" row-tile axis >= 2 steps when possible.
    if n_pad // tm < 2 and n_pad % (2 * LANE) == 0:
        tm = _pick_tile(n_pad, n_pad // 2)

    # Keep H resident in VMEM for the agg kernel when it comfortably fits.
    h_resident = (n_pad * fout_p * 2) <= min(16 * 1024 * 1024, _vmem_limit_bytes() // 6)

    # Zero-pad to lane-dense / tile-aligned shapes; MXU operands in bf16.
    x_p = jnp.zeros((n_pad, fin_p), jnp.bfloat16).at[:n, :fin].set(
        x.astype(jnp.bfloat16))
    w_cat = jnp.zeros((fin_p, 2 * fout_p), jnp.bfloat16)
    w_cat = w_cat.at[:fin, :fout].set(w_self.astype(jnp.bfloat16))
    w_cat = w_cat.at[:fin, fout_p:fout_p + fout].set(w_neigh.astype(jnp.bfloat16))
    b_p = jnp.zeros((1, fout_p), jnp.float32).at[:, :fout].set(
        b.astype(jnp.float32).reshape(1, -1))

    s, h = _project(x_p, w_cat, b_p, tm)                       # S = X@Ws+b, H = X@Wn
    out_p = _aggregate(adj01, h, s, inv_deg, tm, tk, h_resident)  # inv_deg*(A@H) + S

    if n_pad == n and fout_p == fout:
        return out_p.astype(x.dtype)
    return out_p[:n, :fout].astype(x.dtype)


# ------------------------------- JAX glue ------------------------------------ #
def build_adjacency(edge_index, n_pad):
    """Padded int8 adjacency A01[dst, src] = edge multiplicity, and f32 1/in-degree."""
    src, dst = edge_index[0], edge_index[1]
    a = jnp.zeros((n_pad, n_pad), jnp.int8).at[dst, src].add(jnp.int8(1))
    deg = jnp.zeros((n_pad, 1), jnp.float32).at[dst, 0].add(1.0)   # O(E), not O(N^2)
    inv_deg = jnp.where(deg > 0, 1.0 / jnp.maximum(deg, 1.0), 0.0)
    return a, inv_deg


def xavier_uniform(key, fan_in, fan_out, dtype=jnp.float32):
    limit = jnp.sqrt(6.0 / (fan_in + fan_out))
    return jax.random.uniform(
        key, (fan_in, fan_out), dtype=dtype, minval=-limit, maxval=limit
    )


def init_gnn_params(key, in_channels, out_channels):
    k1, k2 = jax.random.split(key)
    # weights_init: xavier_uniform_ on Linear weights, bias filled with 0.
    w_self = xavier_uniform(k1, in_channels, out_channels)
    w_neigh = xavier_uniform(k2, in_channels, out_channels)
    b = jnp.zeros((1, out_channels), jnp.float32)
    return w_self, w_neigh, b


def gnn_forward(x, edge_index, params):
    # Dropout from args.dropout is identity at inference; GNN.forward returns the
    # conv output directly (self.relu is never applied in forward).
    w_self, w_neigh, b = params
    n_pad = _padded_nodes(x.shape[0])
    adj01, inv_deg = build_adjacency(edge_index, n_pad)
    return sage_conv_pallas(x, adj01, inv_deg, w_self, w_neigh, b)


def gnn_forward_ref(x, edge_index, params):
    """Pure-JAX f32 reference for the numerical sanity check."""
    w_self, w_neigh, b = params
    n = x.shape[0]
    src, dst = edge_index[0], edge_index[1]
    a = jnp.zeros((n, n), jnp.float32).at[dst, src].add(1.0)
    deg = a.sum(axis=1, keepdims=True)
    a = a * jnp.where(deg > 0, 1.0 / jnp.maximum(deg, 1.0), 0.0)
    return x @ w_self + a @ (x @ w_neigh) + b


# --------------------------------- main -------------------------------------- #
if __name__ == "__main__":
    key = jax.random.PRNGKey(0)
    k_x, k_e, k_p = jax.random.split(key, 3)

    num_nodes = 16
    in_channels = 32
    out_channels = 32
    num_edges = 40

    x = jax.random.normal(k_x, (num_nodes, in_channels), jnp.float32)
    edge_index = jax.random.randint(
        k_e, (2, num_edges), minval=0, maxval=num_nodes, dtype=jnp.int32
    )

    params = init_gnn_params(k_p, in_channels, out_channels)

    out = gnn_forward(x, edge_index, params)
    jax.block_until_ready(out)

    ref = gnn_forward_ref(x, edge_index, params)

    assert out.shape == (num_nodes, out_channels)
    assert bool(jnp.all(jnp.isfinite(out)))
    # bf16 MXU operands (f32 accumulation, exact int8 adjacency, f32 1/deg) vs f32 ref.
    assert bool(jnp.allclose(out, ref, rtol=5e-2, atol=5e-2))
    print("KERNEL_OK")
</pallas_src>

<mosaic_0001>
module attributes {stable_mosaic.version = 11 : i64} {
  func.func @proj_kernel(%arg0: i32, %arg1: memref<128x128xbf16, #tpu.memory_space<vmem>>, %arg2: memref<128x256xbf16, #tpu.memory_space<vmem>>, %arg3: memref<1x128xf32, #tpu.memory_space<vmem>>, %arg4: memref<128x128xf32, #tpu.memory_space<vmem>>, %arg5: memref<128x128xbf16, #tpu.memory_space<vmem>>) attributes {dimension_semantics = [#tpu.dimension_semantics<parallel>], iteration_bounds = array<i64: 1>, scalar_prefetch = 0 : i64, scratch_operands = 0 : i64, tpu.core_type = #tpu.core_type<tc>, window_params = [{transform_indices = @transform_0, window_bounds = array<i64: 128, 128>}, {pipeline_mode = #tpu.pipeline_mode<synchronous>, transform_indices = @transform_1, window_bounds = array<i64: 128, 256>}, {pipeline_mode = #tpu.pipeline_mode<synchronous>, transform_indices = @transform_2, window_bounds = array<i64: 1, 128>}, {transform_indices = @transform_3, window_bounds = array<i64: 128, 128>}, {transform_indices = @transform_4, window_bounds = array<i64: 128, 128>}]} {
    %c0 = arith.constant 0 : index
    %c0_0 = arith.constant 0 : index
    %0 = vector.load %arg1[%c0, %c0_0] : memref<128x128xbf16, #tpu.memory_space<vmem>>, vector<128x128xbf16>
    %c0_1 = arith.constant 0 : index
    %c0_2 = arith.constant 0 : index
    %1 = vector.load %arg2[%c0_1, %c0_2] : memref<128x256xbf16, #tpu.memory_space<vmem>>, vector<128x256xbf16>
    %cst = arith.constant dense<0.000000e+00> : vector<128x256xf32>
    %2 = tpu.matmul %0, %1, %cst {dimension_numbers = #tpu.dot_dimension_numbers<[1], [0], [0], [1], [0, 0, 1, 1], [], []>} : vector<128x128xbf16>, vector<128x256xbf16>, vector<128x256xf32> -> vector<128x256xf32>
    %3 = vector.extract_strided_slice %2 {offsets = [0, 0], sizes = [128, 128], strides = [1, 1]} : vector<128x256xf32> to vector<128x128xf32>
    %c0_3 = arith.constant 0 : index
    %c0_4 = arith.constant 0 : index
    %4 = vector.load %arg3[%c0_3, %c0_4] : memref<1x128xf32, #tpu.memory_space<vmem>>, vector<1x128xf32>
    %5 = vector.broadcast %4 : vector<1x128xf32> to vector<128x128xf32>
    %6 = arith.addf %3, %5 : vector<128x128xf32>
    %c0_5 = arith.constant 0 : index
    %c0_6 = arith.constant 0 : index
    %7 = vector.load %arg4[%c0_5, %c0_6] : memref<128x128xf32, #tpu.memory_space<vmem>>, vector<128x128xf32>
    tpu.vector_store %arg4[%c0_5, %c0_6], %6 {strides = array<i32>} : memref<128x128xf32, #tpu.memory_space<vmem>>, vector<128x128xf32>,
    %8 = vector.extract_strided_slice %2 {offsets = [0, 128], sizes = [128, 128], strides = [1, 1]} : vector<128x256xf32> to vector<128x128xf32>
    %9 = arith.truncf %8 : vector<128x128xf32> to vector<128x128xbf16>
    %c0_7 = arith.constant 0 : index
    %c0_8 = arith.constant 0 : index
    %10 = vector.load %arg5[%c0_7, %c0_8] : memref<128x128xbf16, #tpu.memory_space<vmem>>, vector<128x128xbf16>
    tpu.vector_store %arg5[%c0_7, %c0_8], %9 {strides = array<i32>} : memref<128x128xbf16, #tpu.memory_space<vmem>>, vector<128x128xbf16>,
    return
  }
  func.func @transform_0(%arg0: i32) -> (i32, i32) {
    %c0_i32 = arith.constant 0 : i32
    %c0_i32_0 = arith.constant 0 : i32
    return %arg0, %c0_i32 : i32, i32
  }
  func.func @transform_1(%arg0: i32) -> (i32, i32) {
    %c0_i32 = arith.constant 0 : i32
    %c0_i32_0 = arith.constant 0 : i32
    %c0_i32_1 = arith.constant 0 : i32
    return %c0_i32, %c0_i32_0 : i32, i32
  }
  func.func @transform_2(%arg0: i32) -> (i32, i32) {
    %c0_i32 = arith.constant 0 : i32
    %c0_i32_0 = arith.constant 0 : i32
    %c0_i32_1 = arith.constant 0 : i32
    return %c0_i32, %c0_i32_0 : i32, i32
  }
  func.func @transform_3(%arg0: i32) -> (i32, i32) {
    %c0_i32 = arith.constant 0 : i32
    %c0_i32_0 = arith.constant 0 : i32
    return %arg0, %c0_i32 : i32, i32
  }
  func.func @transform_4(%arg0: i32) -> (i32, i32) {
    %c0_i32 = arith.constant 0 : i32
    %c0_i32_0 = arith.constant 0 : i32
    return %arg0, %c0_i32 : i32, i32
  }
}

module attributes {stable_mosaic.version = 11 : i64} {
  func.func @agg_kernel(%arg0: i32, %arg1: i32, %arg2: memref<128x128xi8, #tpu.memory_space<vmem>>, %arg3: memref<128x128xbf16, #tpu.memory_space<vmem>>, %arg4: memref<128x128xf32, #tpu.memory_space<vmem>>, %arg5: memref<128x1xf32, #tpu.memory_space<vmem>>, %arg6: memref<128x128xf32, #tpu.memory_space<vmem>>) attributes {dimension_semantics = [#tpu.dimension_semantics<parallel>, #tpu.dimension_semantics<arbitrary>], iteration_bounds = array<i64: 1, 1>, scalar_prefetch = 0 : i64, scratch_operands = 0 : i64, tpu.core_type = #tpu.core_type<tc>, window_params = [{transform_indices = @transform_0, window_bounds = array<i64: 128, 128>}, {pipeline_mode = #tpu.pipeline_mode<synchronous>, transform_indices = @transform_1, window_bounds = array<i64: 128, 128>}, {transform_indices = @transform_2, window_bounds = array<i64: 128, 128>}, {transform_indices = @transform_3, window_bounds = array<i64: 128, 1>}, {transform_indices = @transform_4, window_bounds = array<i64: 128, 128>}]} {
    %c0 = arith.constant 0 : index
    %c0_0 = arith.constant 0 : index
    %0 = vector.load %arg2[%c0, %c0_0] : memref<128x128xi8, #tpu.memory_space<vmem>>, vector<128x128xi8>
    %1 = arith.sitofp %0 : vector<128x128xi8> to vector<128x128xbf16>
    %c128_i32 = arith.constant 128 : i32
    %2 = arith.muli %arg1, %c128_i32 : i32
    %3 = tpu.assume_multiple %2, 128 : i32
    %4 = arith.index_cast %3 : i32 to index
    %c0_1 = arith.constant 0 : index
    %5 = vector.load %arg3[%4, %c0_1] : memref<128x128xbf16, #tpu.memory_space<vmem>>, vector<128x128xbf16>
    %cst = arith.constant dense<0.000000e+00> : vector<128x128xf32>
    %6 = tpu.matmul %1, %5, %cst {dimension_numbers = #tpu.dot_dimension_numbers<[1], [0], [0], [1], [0, 0, 1, 1], [], []>} : vector<128x128xbf16>, vector<128x128xbf16>, vector<128x128xf32> -> vector<128x128xf32>
    %c0_i32 = arith.constant 0 : i32
    %7 = arith.cmpi eq, %arg1, %c0_i32 : i32
    %8 = arith.extui %7 : i1 to i32
    %c0_i32_2 = arith.constant 0 : i32
    %9 = arith.cmpi ne, %8, %c0_i32_2 : i32
    scf.if %9 {
      %c0_7 = arith.constant 0 : index
      %c0_8 = arith.constant 0 : index
      %16 = vector.load %arg6[%c0_7, %c0_8] : memref<128x128xf32, #tpu.memory_space<vmem>>, vector<128x128xf32>
      tpu.vector_store %arg6[%c0_7, %c0_8], %6 {strides = array<i32>} : memref<128x128xf32, #tpu.memory_space<vmem>>, vector<128x128xf32>,
    } else {
    }
    %c0_i32_3 = arith.constant 0 : i32
    %10 = arith.cmpi sgt, %arg1, %c0_i32_3 : i32
    %11 = arith.extui %10 : i1 to i32
    %c0_i32_4 = arith.constant 0 : i32
    %12 = arith.cmpi ne, %11, %c0_i32_4 : i32
    scf.if %12 {
      %c0_7 = arith.constant 0 : index
      %c0_8 = arith.constant 0 : index
      %16 = vector.load %arg6[%c0_7, %c0_8] : memref<128x128xf32, #tpu.memory_space<vmem>>, vector<128x128xf32>
      %17 = arith.addf %16, %6 : vector<128x128xf32>
      %c0_9 = arith.constant 0 : index
      %c0_10 = arith.constant 0 : index
      %18 = vector.load %arg6[%c0_9, %c0_10] : memref<128x128xf32, #tpu.memory_space<vmem>>, vector<128x128xf32>
      tpu.vector_store %arg6[%c0_9, %c0_10], %17 {strides = array<i32>} : memref<128x128xf32, #tpu.memory_space<vmem>>, vector<128x128xf32>,
    } else {
    }
    %c0_i32_5 = arith.constant 0 : i32
    %13 = arith.cmpi eq, %arg1, %c0_i32_5 : i32
    %14 = arith.extui %13 : i1 to i32
    %c0_i32_6 = arith.constant 0 : i32
    %15 = arith.cmpi ne, %14, %c0_i32_6 : i32
    scf.if %15 {
      %c0_7 = arith.constant 0 : index
      %c0_8 = arith.constant 0 : index
      %16 = vector.load %arg6[%c0_7, %c0_8] : memref<128x128xf32, #tpu.memory_space<vmem>>, vector<128x128xf32>
      %c0_9 = arith.constant 0 : index
      %c0_10 = arith.constant 0 : index
      %17 = vector.load %arg5[%c0_9, %c0_10] : memref<128x1xf32, #tpu.memory_space<vmem>>, vector<128x1xf32>
      %18 = vector.broadcast %17 : vector<128x1xf32> to vector<128x128xf32>
      %19 = arith.mulf %16, %18 : vector<128x128xf32>
      %c0_11 = arith.constant 0 : index
      %c0_12 = arith.constant 0 : index
      %20 = vector.load %arg4[%c0_11, %c0_12] : memref<128x128xf32, #tpu.memory_space<vmem>>, vector<128x128xf32>
      %21 = arith.addf %19, %20 : vector<128x128xf32>
      %c0_13 = arith.constant 0 : index
      %c0_14 = arith.constant 0 : index
      %22 = vector.load %arg6[%c0_13, %c0_14] : memref<128x128xf32, #tpu.memory_space<vmem>>, vector<128x128xf32>
      tpu.vector_store %arg6[%c0_13, %c0_14], %21 {strides = array<i32>} : memref<128x128xf32, #tpu.memory_space<vmem>>, vector<128x128xf32>,
    } else {
    }
    return
  }
  func.func @transform_0(%arg0: i32, %arg1: i32) -> (i32, i32) {
    %c0_i32 = arith.constant 0 : i32
    return %arg0, %arg1 : i32, i32
  }
  func.func @transform_1(%arg0: i32, %arg1: i32) -> (i32, i32) {
    %c0_i32 = arith.constant 0 : i32
    %c0_i32_0 = arith.constant 0 : i32
    %c0_i32_1 = arith.constant 0 : i32
    return %c0_i32, %c0_i32_0 : i32, i32
  }
  func.func @transform_2(%arg0: i32, %arg1: i32) -> (i32, i32) {
    %c0_i32 = arith.constant 0 : i32
    %c0_i32_0 = arith.constant 0 : i32
    return %arg0, %c0_i32 : i32, i32
  }
  func.func @transform_3(%arg0: i32, %arg1: i32) -> (i32, i32) {
    %c0_i32 = arith.constant 0 : i32
    %c0_i32_0 = arith.constant 0 : i32
    return %arg0, %c0_i32 : i32, i32
  }
  func.func @transform_4(%arg0: i32, %arg1: i32) -> (i32, i32) {
    %c0_i32 = arith.constant 0 : i32
    %c0_i32_0 = arith.constant 0 : i32
    return %arg0, %c0_i32 : i32, i32
  }
}

</mosaic_0001>

<bundles_post_ra>
// kernel: sage_conv_pallas.3
= control target key start
LH: loop header
LB: loop body
LE: loop exit
PB: predicated region body
PF: predicated region fallthrough
CT: control target
= control target key end

     0   :  { %v536_v1 = vmov 0   ;;  %s762_s1 = inlined_call_operand.vmem [shape: bf16[128,128], index: 1, kind: input, shape index: {}]   ;;  %s763_s0 = inlined_call_operand.vmem [shape: s8[128,128], index: 0, kind: input, shape index: {}]   ;;  %s764_s3 = inlined_call_operand.vmem [shape: f32[128,1], index: 3, kind: input, shape index: {}]   ;;  %s765_s2 = inlined_call_operand.vmem [shape: f32[128,128], index: 2, kind: input, shape index: {}]   ;;  %s766_s4 = inlined_call_operand.vmem [shape: f32[128,128], index: 4, kind: output, shape index: {}]  }
   0x1   :  { %v528_v0 = vld [vmem:[%s762_s1] sm:$0xff]   ;;  %527 = vset.pattern.permute.xlu1 %v536_v1  ;;  %526 = vset.pattern.permute.xlu0 %v536_v1  ;;  %v529_v2 = vld [vmem:[%s762_s1 + $0x8] sm:$0xff]   ;;  %v530_v3 = vld [vmem:[%s762_s1 + $0x10] sm:$0xff]  }
   0x2   :  { %477 = vmatprep.subr.bf16.mxu0 %v528_v0  ;;  %509 = vmatprep.subr.bf16.mxu1 %v528_v0  ;;  %v531_v4 = vld [vmem:[%s762_s1 + $0x18] sm:$0xff]   ;;  %v577_v5 = vld [vmem:[%s763_s0] sm:$0xff]  ;;  %v582_v6 = vld [vmem:[%s763_s0 + $0x10] sm:$0xff] }
   0x3   :  { %478 = vmatpush3.bf16.msra.mxu0 %v528_v0  ;;  %517 = vmatpush3.bf16.msra.mxu1 %v528_v0  ;;  %v22_v7 = vunpack.c.l.s8.bf16 %v577_v5  ;;  %v26_v8 = vunpack.c.l.s8.bf16 %v582_v6  ;;  %v289_v9 = vld [vmem:[%s764_s3 + $0x10] sm:$0xff]  ;;  %v287_v10 = vld [vmem:[%s764_s3] sm:$0xff]  ;;  %v290_v11 = vld [vmem:[%s764_s3 + $0x18] sm:$0xff]  ;;  %v23_v27 = vunpack.c.h.s8.bf16 %v577_v5  ;;  %v27_v28 = vunpack.c.h.s8.bf16 %v582_v6 }
   0x4   :  { %479 = vmatprep.subr.bf16.mxu0 %v529_v2  ;;  %510 = vmatprep.subr.bf16.mxu1 %v529_v2  ;;  %v288_v12 = vld [vmem:[%s764_s3 + $0x8] sm:$0xff]  ;;  %v532_v13 = vld [vmem:[%s762_s1 + $0x20] sm:$0xff]   ;;  %v294_v17 = vld [vmem:[%s764_s3 + $0x38] sm:$0xff] }
   0x5   :  { %315 = vperm.xlu1 %527, %v289_v9   ;;  %305 = vperm.xlu0 %526, %v287_v10   ;;  %v292_v14 = vld [vmem:[%s764_s3 + $0x28] sm:$0xff]  ;;  %v291_v15 = vld [vmem:[%s764_s3 + $0x20] sm:$0xff]  ;;  %v293_v18 = vld [vmem:[%s764_s3 + $0x30] sm:$0xff] }
   0x6   :  { %493 = vmatprep.mubr.bf16.mxu0 %v22_v7  ;;  %501 = vmatprep.mubr.bf16.mxu1 %v26_v8  ;;  %v533_v16 = vld [vmem:[%s762_s1 + $0x28] sm:$0xff]   ;;  %v534_v19 = vld [vmem:[%s762_s1 + $0x30] sm:$0xff]   ;;  %v295_v21 = vld [vmem:[%s764_s3 + $0x40] sm:$0xff] }
   0x7   :  { %480 = vmatpush3.bf16.msra.mxu0 %v529_v2  ;;  %518 = vmatpush3.bf16.msra.mxu1 %v529_v2  ;;  %v296_v20 = vld [vmem:[%s764_s3 + $0x48] sm:$0xff]  ;;  %v535_v22 = vld [vmem:[%s762_s1 + $0x38] sm:$0xff]   ;;  %v297_v24 = vld [vmem:[%s764_s3 + $0x50] sm:$0xff] }
   0x8   :  { %481 = vmatprep.subr.bf16.mxu0 %v530_v3  ;;  %511 = vmatprep.subr.bf16.mxu1 %v530_v3  ;;  %v298_v23 = vld [vmem:[%s764_s3 + $0x58] sm:$0xff]  ;;  %v19_v25 = vld [vmem:[%s763_s0 + $0x8] sm:$0xff]  ;;  %v299_v32 = vld [vmem:[%s764_s3 + $0x60] sm:$0xff] }
   0x9   :  { %320 = vperm.xlu1 %527, %v290_v11   ;;  %310 = vperm.xlu0 %526, %v288_v12   ;;  %v21_v26 = vld [vmem:[%s763_s0 + $0x18] sm:$0xff]  ;;  %v24_v29 = vunpack.c.l.s8.bf16 %v19_v25  ;;  %v300_v31 = vld [vmem:[%s764_s3 + $0x68] sm:$0xff]  ;;  %v301_v34 = vld [vmem:[%s764_s3 + $0x70] sm:$0xff]  ;;  %v25_v35 = vunpack.c.h.s8.bf16 %v19_v25 }
   0xa   :  { %v28_v30 = vunpack.c.l.s8.bf16 %v21_v26  ;;  %v302_v33 = vld [vmem:[%s764_s3 + $0x78] sm:$0xff]  ;;  %v29_v36 = vunpack.c.h.s8.bf16 %v21_v26  ;;  %v401_v52 = vld [vmem:[%s765_s2 + $0x10] sm:$0xff]  ;;  %v399_v58 = vld [vmem:[%s765_s2] sm:$0xff] }
   0xb   :  { %482 = vmatpush3.bf16.msra.mxu0 %v530_v3  ;;  %519 = vmatpush3.bf16.msra.mxu1 %v530_v3  ;;  %v409_v54 = vld [vmem:[%s765_s2 + $0x50] sm:$0xff]  ;;  %v407_v60 = vld [vmem:[%s765_s2 + $0x40] sm:$0xff]  ;;  %v402_v0 = vld [vmem:[%s765_s2 + $0x18] sm:$0xff] }
   0xc   :  { %483 = vmatprep.subr.bf16.mxu0 %v531_v4  ;;  %512 = vmatprep.subr.bf16.mxu1 %v531_v4  ;;  %v410_v2 = vld [vmem:[%s765_s2 + $0x58] sm:$0xff]  ;;  %v400_v8 = vld [vmem:[%s765_s2 + $0x8] sm:$0xff] }
   0xd   :  { %330 = vperm.xlu1 %527, %v292_v14   ;;  %325 = vperm.xlu0 %526, %v291_v15   ;;  %v408_v10 = vld [vmem:[%s765_s2 + $0x48] sm:$0xff] }
   0xf   :  { %484 = vmatpush3.bf16.msra.mxu0 %v531_v4  ;;  %520 = vmatpush3.bf16.msra.mxu1 %v531_v4 }
  0x10   :  { %485 = vmatprep.subr.bf16.mxu0 %v532_v13  ;;  %513 = vmatprep.subr.bf16.mxu1 %v532_v13 }
  0x11   :  { %340 = vperm.xlu1 %527, %v294_v17   ;;  %335 = vperm.xlu0 %526, %v293_v18  }
  0x13   :  { %486 = vmatpush3.bf16.msra.mxu0 %v532_v13  ;;  %521 = vmatpush3.bf16.msra.mxu1 %v532_v13 }
  0x14   :  { %487 = vmatprep.subr.bf16.mxu0 %v533_v16  ;;  %514 = vmatprep.subr.bf16.mxu1 %v533_v16 }
  0x15   :  { %350 = vperm.xlu1 %527, %v296_v20   ;;  %345 = vperm.xlu0 %526, %v295_v21  }
  0x17   :  { %488 = vmatpush3.bf16.msra.mxu0 %v533_v16  ;;  %522 = vmatpush3.bf16.msra.mxu1 %v533_v16 }
  0x18   :  { %489 = vmatprep.subr.bf16.mxu0 %v534_v19  ;;  %515 = vmatprep.subr.bf16.mxu1 %v534_v19 }
  0x19   :  { %360 = vperm.xlu1 %527, %v298_v23   ;;  %355 = vperm.xlu0 %526, %v297_v24   ;;  %v413_v24 = vld [vmem:[%s765_s2 + $0x70] sm:$0xff] }
  0x1b   :  { %490 = vmatpush3.bf16.msra.mxu0 %v534_v19  ;;  %523 = vmatpush3.bf16.msra.mxu1 %v534_v19 }
  0x1c   :  { %491 = vmatprep.subr.bf16.mxu0 %v535_v22  ;;  %516 = vmatprep.subr.bf16.mxu1 %v535_v22 }
  0x1d   :  { %370 = vperm.xlu1 %527, %v300_v31   ;;  %365 = vperm.xlu0 %526, %v299_v32  }
  0x1f   :  { %492 = vmatpush3.bf16.msra.mxu0 %v535_v22  ;;  %524 = vmatpush3.bf16.msra.mxu1 %v535_v22  ;;  %v405_v22 = vld [vmem:[%s765_s2 + $0x30] sm:$0xff] }
  0x21   :  { %380 = vperm.xlu1 %527, %v302_v33   ;;  %375 = vperm.xlu0 %526, %v301_v34   ;;  %v406_v34 = vld [vmem:[%s765_s2 + $0x38] sm:$0xff] }
  0x22   :  { %494 = vmatmul.mubr.bf16.vlgmr.msra.gmra.mrb[0].mxu0 %v23_v27  ;;  %502 = vmatmul.mubr.bf16.vlgmr.msra.gmra.mrb[0].mxu1 %v27_v28  ;;  %v403_v28 = vld [vmem:[%s765_s2 + $0x20] sm:$0xff] }
  0x23   :  { %497 = vmatprep.mubr.bf16.mxu0 %v24_v29  ;;  %505 = vmatprep.mubr.bf16.mxu1 %v28_v30  ;;  %v411_v30 = vld [vmem:[%s765_s2 + $0x60] sm:$0xff] }
  0x2a   :  { %498 = vmatmul.mubr.bf16.gmra.mrb[4].mxu0 %v25_v35  ;;  %506 = vmatmul.mubr.bf16.gmra.mrb[4].mxu1 %v29_v36  ;;  %v414_v36 = vld [vmem:[%s765_s2 + $0x78] sm:$0xff] }
  0x84   :  { %v316_v37 = vpop.permute.xlu1 %315  ;;  %v306_v38 = vpop.permute.xlu0 %305 }
  0x88   :  { %v321_v39 = vpop.permute.xlu1 %320  ;;  %v311_v40 = vpop.permute.xlu0 %310 }
  0x8c   :  { %v654_v41 = vpop.permute.xlu1 %330  ;;  %v656_v42 = vpop.permute.xlu0 %325 }
  0x90   :  { %v658_v43 = vpop.permute.xlu1 %340  ;;  %v336_v44 = vpop.permute.xlu0 %335 }
  0x94   :  { %v351_v45 = vpop.permute.xlu1 %350  ;;  %v346_v46 = vpop.permute.xlu0 %345 }
  0x98   :  { %v361_v47 = vpop.permute.xlu1 %360  ;;  %v356_v48 = vpop.permute.xlu0 %355 }
  0x9c   :  { %v660_v49 = vpop.permute.xlu1 %370  ;;  %v366_v50 = vpop.permute.xlu0 %365 }
  0xa0   :  { %v381_v19 = vpop.permute.xlu1 %380  ;;  %v376_v20 = vpop.permute.xlu0 %375 }
  0xf5   :  { %v495_v51 = vpop.f32.mrb[0].mxu0  ;;  %v503_v53 = vpop.f32.mrb[0].mxu1 }
  0xf6   :  { %v385_v55 = vmul.f32 %v495_v51, %v316_v37  ;;  %v393_v56 = vmul.f32 %v503_v53, %v356_v48  ;;  %v133_v57 = vpop.f32.mrb[1].mxu0  ;;  %v165_v59 = vpop.f32.mrb[1].mxu1 }
  0xf7   :  { %v383_v61 = vmul.f32 %v306_v38, %v133_v57  ;;  %v391_v62 = vmul.f32 %v346_v46, %v165_v59  ;;  %v496_v63 = vpop.f32.mrb[2].mxu0  ;;  %v504_v1 = vpop.f32.mrb[2].mxu1  ;;  %v412_v46 = vld [vmem:[%s765_s2 + $0x68] sm:$0xff] }
  0xf8   :  { %v417_v3 = vadd.f32 %v401_v52, %v385_v55  ;;  %v425_v4 = vadd.f32 %v409_v54, %v393_v56  ;;  %v386_v5 = vmul.f32 %v496_v63, %v321_v39  ;;  %v394_v6 = vmul.f32 %v504_v1, %v361_v47  ;;  %v136_v7 = vpop.f32.mrb[3].mxu0  ;;  %v168_v9 = vpop.f32.mrb[3].mxu1 }
  0xf9   :  { %v415_v11 = vadd.f32 %v399_v58, %v383_v61  ;;  %v423_v12 = vadd.f32 %v407_v60, %v391_v62  ;;  %v384_v13 = vmul.f32 %v311_v40, %v136_v7  ;;  %v392_v14 = vmul.f32 %v351_v45, %v168_v9 }
  0xfa   :  { %433 = vst [vmem:[%s766_s4 + $0x10] sm:$0xff] %v417_v3  ;;  %441 = vst [vmem:[%s766_s4 + $0x50] sm:$0xff] %v425_v4  ;;  %v418_v15 = vadd.f32 %v402_v0, %v386_v5  ;;  %v426_v16 = vadd.f32 %v410_v2, %v394_v6 }
  0xfb   :  { %431 = vst [vmem:[%s766_s4] sm:$0xff] %v415_v11  ;;  %439 = vst [vmem:[%s766_s4 + $0x40] sm:$0xff] %v423_v12  ;;  %v416_v17 = vadd.f32 %v400_v8, %v384_v13  ;;  %v424_v18 = vadd.f32 %v408_v10, %v392_v14 }
  0xfc   :  { %434 = vst [vmem:[%s766_s4 + $0x18] sm:$0xff] %v418_v15  ;;  %442 = vst [vmem:[%s766_s4 + $0x58] sm:$0xff] %v426_v16 }
  0xfd   :  { %432 = vst [vmem:[%s766_s4 + $0x8] sm:$0xff] %v416_v17  ;;  %440 = vst [vmem:[%s766_s4 + $0x48] sm:$0xff] %v424_v18  ;;  %v499_v21 = vpop.f32.mrb[4].mxu0  ;;  %v507_v23 = vpop.f32.mrb[4].mxu1 }
  0xfe   :  { %v389_v25 = vmul.f32 %v499_v21, %v336_v44  ;;  %v397_v26 = vmul.f32 %v507_v23, %v376_v20  ;;  %v149_v27 = vpop.f32.mrb[5].mxu0  ;;  %v181_v29 = vpop.f32.mrb[5].mxu1 }
  0xff   :  { %v387_v31 = vmul.f32 %v656_v42, %v149_v27  ;;  %v395_v32 = vmul.f32 %v366_v50, %v181_v29  ;;  %v500_v33 = vpop.f32.mrb[6].mxu0  ;;  %v508_v35 = vpop.f32.mrb[6].mxu1  ;;  %v404_v42 = vld [vmem:[%s765_s2 + $0x28] sm:$0xff] }
 0x100   :  { %v421_v37 = vadd.f32 %v405_v22, %v389_v25  ;;  %v429_v38 = vadd.f32 %v413_v24, %v397_v26  ;;  %v390_v39 = vmul.f32 %v500_v33, %v658_v43  ;;  %v398_v40 = vmul.f32 %v508_v35, %v381_v19  ;;  %v152_v44 = vpop.f32.mrb[7].mxu0  ;;  %v184_v45 = vpop.f32.mrb[7].mxu1 }
 0x101   :  { %v419_v47 = vadd.f32 %v403_v28, %v387_v31  ;;  %v427_v48 = vadd.f32 %v411_v30, %v395_v32  ;;  %v388_v50 = vmul.f32 %v654_v41, %v152_v44  ;;  %v396_v51 = vmul.f32 %v660_v49, %v184_v45 }
 0x102   :  { %437 = vst [vmem:[%s766_s4 + $0x30] sm:$0xff] %v421_v37  ;;  %445 = vst [vmem:[%s766_s4 + $0x70] sm:$0xff] %v429_v38  ;;  %v422_v43 = vadd.f32 %v406_v34, %v390_v39  ;;  %v430_v52 = vadd.f32 %v414_v36, %v398_v40 }
 0x103   :  { %435 = vst [vmem:[%s766_s4 + $0x20] sm:$0xff] %v419_v47  ;;  %443 = vst [vmem:[%s766_s4 + $0x60] sm:$0xff] %v427_v48  ;;  %v420_v41 = vadd.f32 %v404_v42, %v388_v50  ;;  %v428_v49 = vadd.f32 %v412_v46, %v396_v51 }
 0x104   :  { %438 = vst [vmem:[%s766_s4 + $0x38] sm:$0xff] %v422_v43  ;;  %446 = vst [vmem:[%s766_s4 + $0x78] sm:$0xff] %v430_v52 }
 0x105   :  { %436 = vst [vmem:[%s766_s4 + $0x28] sm:$0xff] %v420_v41  ;;  %444 = vst [vmem:[%s766_s4 + $0x68] sm:$0xff] %v428_v49 }

// kernel: sage_conv_pallas.2
= control target key start
LH: loop header
LB: loop body
LE: loop exit
PB: predicated region body
PF: predicated region fallthrough
CT: control target
= control target key end

     0   :  { %v570_v1 = vmov 0   ;;  %s769_s1 = inlined_call_operand.vmem [shape: bf16[128,256], index: 1, kind: input, shape index: {}]   ;;  %s770_s0 = inlined_call_operand.vmem [shape: bf16[128,128], index: 0, kind: input, shape index: {}]   ;;  %s771_s2 = inlined_call_operand.vmem [shape: f32[1,128], index: 2, kind: input, shape index: {}]   ;;  %s772_s3 = inlined_call_operand.vmem [shape: f32[128,128], index: 3, kind: output, shape index: {0}]   ;;  %s773_s4 = inlined_call_operand.vmem [shape: bf16[128,128], index: 4, kind: output, shape index: {1}]  }
   0x1   :  { %v538_v0 = vld [vmem:[%s769_s1 + $0x4] ss:$8 sps:$4 sm:$0xff]   ;;  %209 = vmatprep.mubr.bf16.mxu0 %v570_v1  ;;  %249 = vmatprep.mubr.bf16.mxu1 %v570_v1  ;;  %v540_v2 = vld [vmem:[%s769_s1] ss:$8 sps:$4 sm:$0xff]   ;;  %v541_v3 = vld [vmem:[%s769_s1 + $0x14] ss:$8 sps:$4 sm:$0xff]  }
   0x2   :  { %177 = vmatprep.subr.bf16.mxu0 %v538_v0  ;;  %521 = vmatprep.subr.bf16.mxu1 %v538_v0  ;;  %v543_v4 = vld [vmem:[%s769_s1 + $0x10] ss:$8 sps:$4 sm:$0xff]   ;;  %v544_v5 = vld [vmem:[%s769_s1 + $0x24] ss:$8 sps:$4 sm:$0xff]   ;;  %v546_v6 = vld [vmem:[%s769_s1 + $0x20] ss:$8 sps:$4 sm:$0xff]  }
   0x3   :  { %178 = vmatpush1.bf16.msra.mxu0 %v540_v2  ;;  %529 = vmatpush1.bf16.msra.mxu1 %v540_v2  ;;  %v547_v7 = vld [vmem:[%s769_s1 + $0x34] ss:$8 sps:$4 sm:$0xff]   ;;  %v549_v8 = vld [vmem:[%s769_s1 + $0x30] ss:$8 sps:$4 sm:$0xff]   ;;  %v550_v9 = vld [vmem:[%s769_s1 + $0x44] ss:$8 sps:$4 sm:$0xff]  }
   0x4   :  { %179 = vmatprep.subr.bf16.mxu0 %v541_v3  ;;  %522 = vmatprep.subr.bf16.mxu1 %v541_v3  ;;  %v552_v10 = vld [vmem:[%s769_s1 + $0x40] ss:$8 sps:$4 sm:$0xff]   ;;  %v553_v11 = vld [vmem:[%s769_s1 + $0x54] ss:$8 sps:$4 sm:$0xff]   ;;  %v555_v12 = vld [vmem:[%s769_s1 + $0x50] ss:$8 sps:$4 sm:$0xff]  }
   0x5   :  { %v556_v13 = vld [vmem:[%s769_s1 + $0x64] ss:$8 sps:$4 sm:$0xff]   ;;  %v558_v14 = vld [vmem:[%s769_s1 + $0x60] ss:$8 sps:$4 sm:$0xff]   ;;  %v559_v15 = vld [vmem:[%s769_s1 + $0x74] ss:$8 sps:$4 sm:$0xff]  }
   0x6   :  { %v561_v16 = vld [vmem:[%s769_s1 + $0x70] ss:$8 sps:$4 sm:$0xff]   ;;  %v562_v17 = vld [vmem:[%s770_s0] sm:$0xff]   ;;  %v564_v19 = vld [vmem:[%s770_s0 + $0x8] sm:$0xff]  }
   0x7   :  { %180 = vmatpush1.bf16.msra.mxu0 %v543_v4  ;;  %530 = vmatpush1.bf16.msra.mxu1 %v543_v4  ;;  %v563_v18 = vld [vmem:[%s770_s0 + $0x20] sm:$0xff]   ;;  %v565_v20 = vld [vmem:[%s770_s0 + $0x28] sm:$0xff]   ;;  %v566_v21 = vld [vmem:[%s770_s0 + $0x10] sm:$0xff]  }
   0x8   :  { %181 = vmatprep.subr.bf16.mxu0 %v544_v5  ;;  %523 = vmatprep.subr.bf16.mxu1 %v544_v5  ;;  %v567_v22 = vld [vmem:[%s770_s0 + $0x30] sm:$0xff]   ;;  %v568_v23 = vld [vmem:[%s770_s0 + $0x18] sm:$0xff]   ;;  %v679_v25 = vld [vmem:[%s771_s2] ss:$0 sm:$0xff] }
   0x9   :  { %v569_v24 = vld [vmem:[%s770_s0 + $0x38] sm:$0xff]  }
   0xb   :  { %182 = vmatpush1.bf16.msra.mxu0 %v546_v6  ;;  %531 = vmatpush1.bf16.msra.mxu1 %v546_v6 }
   0xc   :  { %183 = vmatprep.subr.bf16.mxu0 %v547_v7  ;;  %524 = vmatprep.subr.bf16.mxu1 %v547_v7 }
   0xf   :  { %184 = vmatpush1.bf16.msra.mxu0 %v549_v8  ;;  %532 = vmatpush1.bf16.msra.mxu1 %v549_v8 }
  0x10   :  { %185 = vmatprep.subr.bf16.mxu0 %v550_v9  ;;  %525 = vmatprep.subr.bf16.mxu1 %v550_v9 }
  0x13   :  { %186 = vmatpush1.bf16.msra.mxu0 %v552_v10  ;;  %533 = vmatpush1.bf16.msra.mxu1 %v552_v10 }
  0x14   :  { %187 = vmatprep.subr.bf16.mxu0 %v553_v11  ;;  %526 = vmatprep.subr.bf16.mxu1 %v553_v11 }
  0x17   :  { %188 = vmatpush1.bf16.msra.mxu0 %v555_v12  ;;  %534 = vmatpush1.bf16.msra.mxu1 %v555_v12 }
  0x18   :  { %189 = vmatprep.subr.bf16.mxu0 %v556_v13  ;;  %527 = vmatprep.subr.bf16.mxu1 %v556_v13 }
  0x1b   :  { %190 = vmatpush1.bf16.msra.mxu0 %v558_v14  ;;  %535 = vmatpush1.bf16.msra.mxu1 %v558_v14 }
  0x1c   :  { %191 = vmatprep.subr.bf16.mxu0 %v559_v15  ;;  %528 = vmatprep.subr.bf16.mxu1 %v559_v15 }
  0x1f   :  { %192 = vmatpush1.bf16.msra.mxu0 %v561_v16  ;;  %536 = vmatpush1.bf16.msra.mxu1 %v561_v16 }
  0x22   :  { %210 = vmatmul.mubr.bf16.vlgmr.msra.gmra.mrb[0].mxu0 %v562_v17  ;;  %250 = vmatmul.mubr.bf16.vlgmr.msra.gmra.mrb[0].mxu1 %v563_v18 }
  0x23   :  { %219 = vmatprep.mubr.bf16.mxu0 %v570_v1  ;;  %259 = vmatprep.mubr.bf16.mxu1 %v570_v1 }
  0x2a   :  { %220 = vmatmul.mubr.bf16.gmra.mrb[4].mxu0 %v564_v19  ;;  %260 = vmatmul.mubr.bf16.gmra.mrb[4].mxu1 %v565_v20 }
  0x2b   :  { %229 = vmatprep.mubr.bf16.mxu0 %v570_v1  ;;  %269 = vmatprep.mubr.bf16.mxu1 %v570_v1 }
  0x32   :  { %230 = vmatmul.mubr.bf16.gmra.mrb[8].mxu0 %v566_v21  ;;  %270 = vmatmul.mubr.bf16.gmra.mrb[8].mxu1 %v567_v22 }
  0x33   :  { %239 = vmatprep.mubr.bf16.mxu0 %v570_v1  ;;  %279 = vmatprep.mubr.bf16.mxu1 %v570_v1 }
  0x3a   :  { %240 = vmatmul.mubr.bf16.gmra.mrb[12].mxu0 %v568_v23  ;;  %280 = vmatmul.mubr.bf16.gmra.mrb[12].mxu1 %v569_v24 }
  0xf5   :  { %v211_v26 = vpop.f32.mrb[0].mxu0  ;;  %v251_v27 = vpop.f32.mrb[0].mxu1 }
  0xf6   :  { %v297_v28 = vadd.f32 %v679_v25, %v211_v26  ;;  %v305_v29 = vadd.f32 %v679_v25, %v251_v27  ;;  %v213_v30 = vpop.f32.mrb[1].mxu0  ;;  %v253_v31 = vpop.f32.mrb[1].mxu1 }
  0xf7   :  { %v215_v32 = vpop.f32.mrb[2].mxu0  ;;  %v255_v33 = vpop.f32.mrb[2].mxu1 }
  0xf8   :  { %313 = vst [vmem:[%s772_s3] sm:$0xff] %v297_v28  ;;  %321 = vst [vmem:[%s772_s3 + $0x40] sm:$0xff] %v305_v29  ;;  %v298_v34 = vadd.f32 %v679_v25, %v215_v32  ;;  %v306_v35 = vadd.f32 %v679_v25, %v255_v33  ;;  %v217_v36 = vpop.f32.mrb[3].mxu0  ;;  %v257_v37 = vpop.f32.mrb[3].mxu1 }
  0xf9   :  { %v477_v38 = vpack.c.bf16 %v217_v36, %v213_v30  ;;  %v497_v39 = vpack.c.bf16 %v257_v37, %v253_v31 }
  0xfa   :  { %314 = vst [vmem:[%s772_s3 + $0x8] sm:$0xff] %v298_v34  ;;  %322 = vst [vmem:[%s772_s3 + $0x48] sm:$0xff] %v306_v35 }
  0xfb   :  { %478 = vst [vmem:[%s773_s4] sm:$0xff] %v477_v38   ;;  %517 = vst [vmem:[%s773_s4 + $0x20] sm:$0xff] %v497_v39  }
  0xfd   :  { %v221_v40 = vpop.f32.mrb[4].mxu0  ;;  %v261_v41 = vpop.f32.mrb[4].mxu1 }
  0xfe   :  { %v299_v42 = vadd.f32 %v679_v25, %v221_v40  ;;  %v307_v43 = vadd.f32 %v679_v25, %v261_v41  ;;  %v223_v44 = vpop.f32.mrb[5].mxu0  ;;  %v263_v45 = vpop.f32.mrb[5].mxu1 }
  0xff   :  { %v225_v46 = vpop.f32.mrb[6].mxu0  ;;  %v265_v47 = vpop.f32.mrb[6].mxu1 }
 0x100   :  { %315 = vst [vmem:[%s772_s3 + $0x10] sm:$0xff] %v299_v42  ;;  %323 = vst [vmem:[%s772_s3 + $0x50] sm:$0xff] %v307_v43  ;;  %v300_v48 = vadd.f32 %v679_v25, %v225_v46  ;;  %v308_v49 = vadd.f32 %v679_v25, %v265_v47  ;;  %v227_v50 = vpop.f32.mrb[7].mxu0  ;;  %v267_v51 = vpop.f32.mrb[7].mxu1 }
 0x101   :  { %v482_v52 = vpack.c.bf16 %v227_v50, %v223_v44  ;;  %v502_v53 = vpack.c.bf16 %v267_v51, %v263_v45 }
 0x102   :  { %316 = vst [vmem:[%s772_s3 + $0x18] sm:$0xff] %v300_v48  ;;  %324 = vst [vmem:[%s772_s3 + $0x58] sm:$0xff] %v308_v49 }
 0x103   :  { %514 = vst [vmem:[%s773_s4 + $0x8] sm:$0xff] %v482_v52   ;;  %518 = vst [vmem:[%s773_s4 + $0x28] sm:$0xff] %v502_v53  }
 0x105   :  { %v231_v54 = vpop.f32.mrb[8].mxu0  ;;  %v271_v55 = vpop.f32.mrb[8].mxu1 }
 0x106   :  { %v301_v56 = vadd.f32 %v679_v25, %v231_v54  ;;  %v309_v57 = vadd.f32 %v679_v25, %v271_v55  ;;  %v233_v58 = vpop.f32.mrb[9].mxu0  ;;  %v273_v59 = vpop.f32.mrb[9].mxu1 }
 0x107   :  { %v235_v60 = vpop.f32.mrb[10].mxu0  ;;  %v275_v61 = vpop.f32.mrb[10].mxu1 }
 0x108   :  { %317 = vst [vmem:[%s772_s3 + $0x20] sm:$0xff] %v301_v56  ;;  %325 = vst [vmem:[%s772_s3 + $0x60] sm:$0xff] %v309_v57  ;;  %v302_v62 = vadd.f32 %v679_v25, %v235_v60  ;;  %v310_v63 = vadd.f32 %v679_v25, %v275_v61  ;;  %v237_v0 = vpop.f32.mrb[11].mxu0  ;;  %v277_v1 = vpop.f32.mrb[11].mxu1 }
 0x109   :  { %v487_v2 = vpack.c.bf16 %v237_v0, %v233_v58  ;;  %v507_v3 = vpack.c.bf16 %v277_v1, %v273_v59 }
 0x10a   :  { %318 = vst [vmem:[%s772_s3 + $0x28] sm:$0xff] %v302_v62  ;;  %326 = vst [vmem:[%s772_s3 + $0x68] sm:$0xff] %v310_v63 }
 0x10b   :  { %515 = vst [vmem:[%s773_s4 + $0x10] sm:$0xff] %v487_v2   ;;  %519 = vst [vmem:[%s773_s4 + $0x30] sm:$0xff] %v507_v3  }
 0x10d   :  { %v241_v4 = vpop.f32.mrb[12].mxu0  ;;  %v281_v5 = vpop.f32.mrb[12].mxu1 }
 0x10e   :  { %v303_v6 = vadd.f32 %v679_v25, %v241_v4  ;;  %v311_v7 = vadd.f32 %v679_v25, %v281_v5  ;;  %v243_v8 = vpop.f32.mrb[13].mxu0  ;;  %v283_v9 = vpop.f32.mrb[13].mxu1 }
 0x10f   :  { %v245_v10 = vpop.f32.mrb[14].mxu0  ;;  %v285_v11 = vpop.f32.mrb[14].mxu1 }
 0x110   :  { %319 = vst [vmem:[%s772_s3 + $0x30] sm:$0xff] %v303_v6  ;;  %327 = vst [vmem:[%s772_s3 + $0x70] sm:$0xff] %v311_v7  ;;  %v304_v12 = vadd.f32 %v679_v25, %v245_v10  ;;  %v312_v13 = vadd.f32 %v679_v25, %v285_v11  ;;  %v247_v14 = vpop.f32.mrb[15].mxu0  ;;  %v287_v15 = vpop.f32.mrb[15].mxu1 }
 0x111   :  { %v492_v16 = vpack.c.bf16 %v247_v14, %v243_v8  ;;  %v512_v17 = vpack.c.bf16 %v287_v15, %v283_v9 }
 0x112   :  { %320 = vst [vmem:[%s772_s3 + $0x38] sm:$0xff] %v304_v12  ;;  %328 = vst [vmem:[%s772_s3 + $0x78] sm:$0xff] %v312_v13 }
 0x113   :  { %516 = vst [vmem:[%s773_s4 + $0x18] sm:$0xff] %v492_v16   ;;  %520 = vst [vmem:[%s773_s4 + $0x38] sm:$0xff] %v512_v17  }

</bundles_post_ra>
